<compile_context>
chip_gen: v6e
topology: v6e:2x2x1
jax: 0.10.0
libtpu: 0.0.40
codegen_flags: <defaults>
</compile_context>

<pallas_src>
import functools

import jax
import jax.numpy as jnp
from jax import lax
from jax.experimental import pallas as pl
from jax.experimental.pallas import tpu as pltpu


def _mlp_kernel(x_ref, w1_ref, b1_ref, w2_ref, b2_ref, w3t_ref, b3_ref, o_ref):
    """Fused 3-layer MLP for one batch tile.  Everything lives in VMEM.

    x / weights are bf16 (MXU-native); accumulation, bias-add and ReLU are
    f32.  The head is computed as w3^T (8,32) x h2^T -> (8, tile) so the
    stored result is a lane-dense (1, batch_tile) row (4 B/row of HBM).
    """
    # layer_1 + ReLU:  (T, F) @ (F, 128) -> f32
    h = jnp.dot(x_ref[...], w1_ref[...], preferred_element_type=jnp.float32)
    h = jnp.maximum(h + b1_ref[...], 0.0)

    # layer_2 + ReLU:  (T, 128) @ (128, 32) -> f32
    h = jnp.dot(h.astype(w2_ref.dtype), w2_ref[...],
                preferred_element_type=jnp.float32)
    h = jnp.maximum(h + b2_ref[...], 0.0)

    # layer_out, transposed orientation (contraction on the last dims, the
    # standard q@k^T MXU pattern):  (8, 32) x (T, 32)^T -> (8, T).
    # Row 0 holds the real head; rows 1..7 of w3t are zero padding.
    y8 = lax.dot_general(w3t_ref[...], h.astype(w3t_ref.dtype),
                         dimension_numbers=(((1,), (1,)), ((), ())),
                         preferred_element_type=jnp.float32)
    o_ref[...] = (y8[0:1, :] + b3_ref[...]).astype(o_ref.dtype)


@functools.partial(jax.jit, static_argnames=("batch_tile",))
def _forward(x, w1, b1, w2, b2, w3t, b3, *, batch_tile):
    """x: (B, F) f32.  Prepared params from prepare_params()."""
    B, F = x.shape
    H1 = w1.shape[1]            # 128
    H2 = w2.shape[1]            # 32

    # Pad batch to a multiple of the tile; padded rows are sliced off below.
    n_tiles = pl.cdiv(B, batch_tile)
    B_pad = n_tiles * batch_tile
    x_p = x.astype(w1.dtype)
    if B_pad != B:
        x_p = jnp.pad(x_p, ((0, B_pad - B), (0, 0)))

    rep = lambda i: (0, 0)      # weights / biases replicated across tiles

    itemsize = jnp.dtype(w1.dtype).itemsize
    cost = pl.CostEstimate(
        flops=2 * B_pad * (F * H1 + H1 * H2 + H2),
        transcendentals=0,
        bytes_accessed=(x_p.size * itemsize
                        + (w1.size + w2.size + w3t.size) * itemsize
                        + (b1.size + b2.size + b3.size) * 4
                        + B_pad * 4),
    )

    out = pl.pallas_call(
        _mlp_kernel,
        out_shape=jax.ShapeDtypeStruct((1, B_pad), jnp.float32),
        grid_spec=pl.GridSpec(
            grid=(n_tiles,),
            in_specs=[
                pl.BlockSpec((batch_tile, F), lambda i: (i, 0)),   # x tile
                pl.BlockSpec((F, H1), rep),                        # w1
                pl.BlockSpec((1, H1), rep),                        # b1
                pl.BlockSpec((H1, H2), rep),                       # w2
                pl.BlockSpec((1, H2), rep),                        # b2
                pl.BlockSpec((8, H2), rep),                        # w3^T (row 0)
                pl.BlockSpec((1, 1), rep),                         # b3
            ],
            out_specs=pl.BlockSpec((1, batch_tile), lambda i: (0, i)),
        ),
        compiler_params=pltpu.CompilerParams(
            dimension_semantics=("parallel",),
        ),
        cost_estimate=cost,
    )(x_p, w1, b1, w2, b2, w3t, b3)

    # Lane-dense (1, B_pad) row -> (B, 1) column.
    return out[0, :B, None]


def _pick_batch_tile(batch):
    """>=2 tiles whenever possible (v7x dual-TC megacore split), capped at
    512 rows (amortizes the ~0.35 us/step overhead; trivially fits VMEM on
    v5e/v6e/v7x even for large F)."""
    b128 = ((batch + 127) // 128) * 128
    if b128 <= 128:
        return 128
    return max(128, min(512, (b128 // 2) // 128 * 128))


def dnn_regression_forward(x, prepared_params, batch_tile=None):
    if batch_tile is None:
        batch_tile = _pick_batch_tile(x.shape[0])
    return _forward(x, *prepared_params, batch_tile=batch_tile)


def prepare_params(params, compute_dtype=jnp.bfloat16):
    """One-time repack (hoisted out of the per-call forward): bf16 (in, out)
    weights, f32 row biases, head stored transposed in an (8, 32) block whose
    row 0 is w3 (rows 1..7 zero)."""
    w1 = params["w1"].astype(compute_dtype)                      # (F, 128)
    b1 = params["b1"].reshape(1, -1).astype(jnp.float32)         # (1, 128)
    w2 = params["w2"].astype(compute_dtype)                      # (128, 32)
    b2 = params["b2"].reshape(1, -1).astype(jnp.float32)         # (1, 32)
    H2 = params["w3"].shape[0]                                   # 32
    w3t = jnp.zeros((8, H2), compute_dtype).at[0, :].set(
        params["w3"].reshape(-1).astype(compute_dtype))          # (8, 32)
    b3 = params["b3"].reshape(1, 1).astype(jnp.float32)          # (1, 1)
    return (w1, b1, w2, b2, w3t, b3)


def init_params(key, num_features, dtype=jnp.float32):
    """Deterministic synthetic parameters (PyTorch Linear-style init),
    stored as (in, out) weights and (1, out) biases."""
    ks = jax.random.split(key, 6)

    def lin(kw, kb, fan_in, fan_out):
        bound = 1.0 / float(fan_in) ** 0.5
        w = jax.random.uniform(kw, (fan_in, fan_out), dtype, -bound, bound)
        b = jax.random.uniform(kb, (1, fan_out), dtype, -bound, bound)
        return w, b

    w1, b1 = lin(ks[0], ks[1], num_features, 128)
    w2, b2 = lin(ks[2], ks[3], 128, 32)
    w3, b3 = lin(ks[4], ks[5], 32, 1)
    return {"w1": w1, "b1": b1, "w2": w2, "b2": b2, "w3": w3, "b3": b3}


def reference_forward(x, p):
    h = jnp.maximum(x @ p["w1"] + p["b1"], 0.0)
    h = jnp.maximum(h @ p["w2"] + p["b2"], 0.0)
    return h @ p["w3"] + p["b3"]


if __name__ == "__main__":
    key = jax.random.PRNGKey(0)
    k_x, k_p = jax.random.split(key)

    B, num_features = 256, 32
    x = jax.random.normal(k_x, (B, num_features), dtype=jnp.float32)
    params = init_params(k_p, num_features=num_features)

    prepared = prepare_params(params)          # one-time repack, outside jit
    out = dnn_regression_forward(x, prepared)  # auto tile: 128 -> 2 tiles
    out = jax.block_until_ready(out)

    ref = reference_forward(x, params)
    assert out.shape == (B, 1), out.shape
    # bf16 MXU inputs -> loosened tolerance vs. the pure-f32 reference.
    max_err = jnp.max(jnp.abs(out - ref))
    assert jnp.allclose(out, ref, atol=5e-2, rtol=5e-2), f"max abs err {max_err}"

    print("KERNEL_OK")
</pallas_src>

<mosaic_0001>
module attributes {stable_mosaic.version = 11 : i64} {
  func.func @_mlp_kernel(%arg0: i32, %arg1: memref<128x32xbf16, #tpu.memory_space<vmem>>, %arg2: memref<32x128xbf16, #tpu.memory_space<vmem>>, %arg3: memref<1x128xf32, #tpu.memory_space<vmem>>, %arg4: memref<128x32xbf16, #tpu.memory_space<vmem>>, %arg5: memref<1x32xf32, #tpu.memory_space<vmem>>, %arg6: memref<8x32xbf16, #tpu.memory_space<vmem>>, %arg7: memref<1x1xf32, #tpu.memory_space<vmem>>, %arg8: memref<1x128xf32, #tpu.memory_space<vmem>>) attributes {dimension_semantics = [#tpu.dimension_semantics<parallel>], iteration_bounds = array<i64: 2>, scalar_prefetch = 0 : i64, scratch_operands = 0 : i64, tpu.core_type = #tpu.core_type<tc>, window_params = [{transform_indices = @transform_0, window_bounds = array<i64: 128, 32>}, {pipeline_mode = #tpu.pipeline_mode<synchronous>, transform_indices = @transform_1, window_bounds = array<i64: 32, 128>}, {pipeline_mode = #tpu.pipeline_mode<synchronous>, transform_indices = @transform_2, window_bounds = array<i64: 1, 128>}, {pipeline_mode = #tpu.pipeline_mode<synchronous>, transform_indices = @transform_3, window_bounds = array<i64: 128, 32>}, {pipeline_mode = #tpu.pipeline_mode<synchronous>, transform_indices = @transform_4, window_bounds = array<i64: 1, 32>}, {pipeline_mode = #tpu.pipeline_mode<synchronous>, transform_indices = @transform_5, window_bounds = array<i64: 8, 32>}, {pipeline_mode = #tpu.pipeline_mode<synchronous>, transform_indices = @transform_6, window_bounds = array<i64: 1, 1>}, {transform_indices = @transform_7, window_bounds = array<i64: 1, 128>}]} {
    %c0 = arith.constant 0 : index
    %c0_0 = arith.constant 0 : index
    %0 = vector.load %arg1[%c0, %c0_0] : memref<128x32xbf16, #tpu.memory_space<vmem>>, vector<128x32xbf16>
    %c0_1 = arith.constant 0 : index
    %c0_2 = arith.constant 0 : index
    %1 = vector.load %arg2[%c0_1, %c0_2] : memref<32x128xbf16, #tpu.memory_space<vmem>>, vector<32x128xbf16>
    %cst = arith.constant dense<0.000000e+00> : vector<128x128xf32>
    %2 = tpu.matmul %0, %1, %cst {dimension_numbers = #tpu.dot_dimension_numbers<[1], [0], [0], [1], [0, 0, 1, 1], [], []>} : vector<128x32xbf16>, vector<32x128xbf16>, vector<128x128xf32> -> vector<128x128xf32>
    %c0_3 = arith.constant 0 : index
    %c0_4 = arith.constant 0 : index
    %3 = vector.load %arg3[%c0_3, %c0_4] : memref<1x128xf32, #tpu.memory_space<vmem>>, vector<1x128xf32>
    %4 = vector.broadcast %3 : vector<1x128xf32> to vector<128x128xf32>
    %5 = arith.addf %2, %4 : vector<128x128xf32>
    %cst_5 = arith.constant 0.000000e+00 : f32
    %6 = vector.broadcast %cst_5 : f32 to vector<128x128xf32>
    %7 = arith.maximumf %5, %6 : vector<128x128xf32>
    %8 = arith.truncf %7 : vector<128x128xf32> to vector<128x128xbf16>
    %c0_6 = arith.constant 0 : index
    %c0_7 = arith.constant 0 : index
    %9 = vector.load %arg4[%c0_6, %c0_7] : memref<128x32xbf16, #tpu.memory_space<vmem>>, vector<128x32xbf16>
    %cst_8 = arith.constant dense<0.000000e+00> : vector<128x32xf32>
    %10 = tpu.matmul %8, %9, %cst_8 {dimension_numbers = #tpu.dot_dimension_numbers<[1], [0], [0], [1], [0, 0, 1, 1], [], []>} : vector<128x128xbf16>, vector<128x32xbf16>, vector<128x32xf32> -> vector<128x32xf32>
    %c0_9 = arith.constant 0 : index
    %c0_10 = arith.constant 0 : index
    %11 = vector.load %arg5[%c0_9, %c0_10] : memref<1x32xf32, #tpu.memory_space<vmem>>, vector<1x32xf32>
    %12 = vector.broadcast %11 : vector<1x32xf32> to vector<128x32xf32>
    %13 = arith.addf %10, %12 : vector<128x32xf32>
    %cst_11 = arith.constant 0.000000e+00 : f32
    %14 = vector.broadcast %cst_11 : f32 to vector<128x32xf32>
    %15 = arith.maximumf %13, %14 : vector<128x32xf32>
    %c0_12 = arith.constant 0 : index
    %c0_13 = arith.constant 0 : index
    %16 = vector.load %arg6[%c0_12, %c0_13] : memref<8x32xbf16, #tpu.memory_space<vmem>>, vector<8x32xbf16>
    %17 = arith.truncf %15 : vector<128x32xf32> to vector<128x32xbf16>
    %cst_14 = arith.constant dense<0.000000e+00> : vector<8x128xf32>
    %18 = tpu.matmul %16, %17, %cst_14 {dimension_numbers = #tpu.dot_dimension_numbers<[1], [1], [0], [0], [0, 0, 1, 0], [], []>} : vector<8x32xbf16>, vector<128x32xbf16>, vector<8x128xf32> -> vector<8x128xf32>
    %19 = vector.extract_strided_slice %18 {offsets = [0, 0], sizes = [1, 128], strides = [1, 1]} : vector<8x128xf32> to vector<1x128xf32>
    %c0_15 = arith.constant 0 : index
    %c0_16 = arith.constant 0 : index
    %20 = vector.load %arg7[%c0_15, %c0_16] : memref<1x1xf32, #tpu.memory_space<vmem>>, vector<1x1xf32>
    %21 = vector.broadcast %20 : vector<1x1xf32> to vector<1x128xf32>
    %22 = arith.addf %19, %21 : vector<1x128xf32>
    %c0_17 = arith.constant 0 : index
    %c0_18 = arith.constant 0 : index
    %23 = vector.load %arg8[%c0_17, %c0_18] : memref<1x128xf32, #tpu.memory_space<vmem>>, vector<1x128xf32>
    tpu.vector_store %arg8[%c0_17, %c0_18], %22 {strides = array<i32>} : memref<1x128xf32, #tpu.memory_space<vmem>>, vector<1x128xf32>,
    return
  }
  func.func @transform_0(%arg0: i32) -> (i32, i32) {
    %c0_i32 = arith.constant 0 : i32
    %c0_i32_0 = arith.constant 0 : i32
    return %arg0, %c0_i32 : i32, i32
  }
  func.func @transform_1(%arg0: i32) -> (i32, i32) {
    %c0_i32 = arith.constant 0 : i32
    %c0_i32_0 = arith.constant 0 : i32
    %c0_i32_1 = arith.constant 0 : i32
    return %c0_i32, %c0_i32_0 : i32, i32
  }
  func.func @transform_2(%arg0: i32) -> (i32, i32) {
    %c0_i32 = arith.constant 0 : i32
    %c0_i32_0 = arith.constant 0 : i32
    %c0_i32_1 = arith.constant 0 : i32
    return %c0_i32, %c0_i32_0 : i32, i32
  }
  func.func @transform_3(%arg0: i32) -> (i32, i32) {
    %c0_i32 = arith.constant 0 : i32
    %c0_i32_0 = arith.constant 0 : i32
    %c0_i32_1 = arith.constant 0 : i32
    return %c0_i32, %c0_i32_0 : i32, i32
  }
  func.func @transform_4(%arg0: i32) -> (i32, i32) {
    %c0_i32 = arith.constant 0 : i32
    %c0_i32_0 = arith.constant 0 : i32
    %c0_i32_1 = arith.constant 0 : i32
    return %c0_i32, %c0_i32_0 : i32, i32
  }
  func.func @transform_5(%arg0: i32) -> (i32, i32) {
    %c0_i32 = arith.constant 0 : i32
    %c0_i32_0 = arith.constant 0 : i32
    %c0_i32_1 = arith.constant 0 : i32
    return %c0_i32, %c0_i32_0 : i32, i32
  }
  func.func @transform_6(%arg0: i32) -> (i32, i32) {
    %c0_i32 = arith.constant 0 : i32
    %c0_i32_0 = arith.constant 0 : i32
    %c0_i32_1 = arith.constant 0 : i32
    return %c0_i32, %c0_i32_0 : i32, i32
  }
  func.func @transform_7(%arg0: i32) -> (i32, i32) {
    %c0_i32 = arith.constant 0 : i32
    %c0_i32_0 = arith.constant 0 : i32
    return %c0_i32, %arg0 : i32, i32
  }
}

</mosaic_0001>

<bundles_post_ra>
// kernel: _forward.1
= control target key start
LH: loop header
LB: loop body
LE: loop exit
PB: predicated region body
PF: predicated region fallthrough
CT: control target
= control target key end

     0   :  { %s1352_s0 = inlined_call_operand.vmem [shape: bf16[256,32], index: 0, kind: input, shape index: {}]   ;;  %s1353_s1 = inlined_call_operand.vmem [shape: bf16[32,128], index: 1, kind: input, shape index: {}]   ;;  %s1354_s2 = inlined_call_operand.vmem [shape: f32[1,128], index: 2, kind: input, shape index: {}]   ;;  %s1355_s3 = inlined_call_operand.vmem [shape: bf16[128,32], index: 3, kind: input, shape index: {}]   ;;  %s1356_s4 = inlined_call_operand.vmem [shape: f32[1,32], index: 4, kind: input, shape index: {}]   ;;  %s1357_s5 = inlined_call_operand.vmem [shape: bf16[8,32], index: 5, kind: input, shape index: {}]   ;;  %s1358_s6 = inlined_call_operand.<no memory space> [shape: f32[1,1], index: 6, kind: input, shape index: {}]   ;;  %s1359_s7 = inlined_call_operand.hbm [shape: f32[1,256], index: 7, kind: output, shape index: {}]  }
   0x1   :  { %v12_v0 = vstv %s1358_s6 }
   0x2   :  { %13 = vst [vmem:[#allocation2] sm:$0x1] %v12_v0 }
   0x3   :  { %14 = vsyncpa [#allocation4], 0 }
   0x4   :  { %16 = vsyncpa [#allocation4 + $0x1], 0  ;;  %s1161_s26 = smov 0   ;;  %s1163_s27 = smov 0  }
   0x5   :  { %s1165_s28 = smov 0   ;;  %s1167_s29 = smov 0  }
   0x6 LB: > { %s845_s6 = sadd.s32 4294967295, %s1112_s29   ;;  %s846_s30 = sadd.s32 4294967294, %s1112_s29   ;;  %s1112_s29 = sphi %s1167_s29, %s1365_s29   ;;  %s1108_s28 = sphi %s1165_s28, %s1364_s28   ;;  %s1104_s27 = sphi %s1163_s27, %s1363_s27   ;;  %s1100_s26 = sphi %s1161_s26, %s1362_s26  }
   0x7   : > { %s1184_s8 = sadd.s32 1, %s1112_s29   ;;  %s181_s9 = sadd.s32 1, %s1108_s28 }
   0x8   : > { %s178_s10 = ssub.s32 %s1112_s29, %s1184_s8  ;;  %p191_p0 = scmp.ne.s32.totalorder %s1108_s28, %s1104_s27 }
   0x9   : > { %p179_p1 = scmp.eq.s32.totalorder %s178_s10, 0  ;;  %p192_p2 = scmp.eq.s32.totalorder %s845_s6, 1 }
   0xa   : > { %p197_p3 = scmp.ne.s32.totalorder %s1104_s27, %s1100_s26  ;;  %p198_p4 = scmp.eq.s32.totalorder %s846_s30, 1 }
   0xb   : > { %s1194_s11 = scalar_select %p179_p1, %s1108_s28, %s181_s9  }
   0xc   : > { %p1196_p5 = por %p192_p2, %p191_p0  ;;  %p1200_p6 = por %p198_p4, %p197_p3 }
   0xd   : > { %p849_p7 = scmp.ge.s32.totalorder %s1112_s29, 1  ;;  %p243_p8 = scmp.lt.s32.totalorder %s1112_s29, 3 }
   0xf   : > { %p244_p9 = pnand %p849_p7, %p243_p8 }
  0x10   : > { %s1209_s16 = sshll.u32 (!%p244_p9), %s845_s6, 4  ;;  %s272_s15 = sand.u32 (!%p244_p9), 1, %s1104_s27  }
  0x11   : > { %247 = sbr.rel (%p244_p9) target bundleno = 737 (0x2e1), region = 48  ;;  %p275_p10 = scmp.lt.s32.totalorder (!%p244_p9), %s1209_s16, 31 }
  0x12   : > { %s273_s17 = scalar_lea.vmem (!%p244_p9), [#allocation3], %s272_s15  ;;  %s1311_s21 = scalar_lea.hbm (!%p244_p9), %s1359_s7, %s1209_s16 }
  0x13   : > { %s791_s18 = sshll.u32 (!%p244_p9), %s273_s17, 4  ;;  %s1117_s24 = smov (!%p244_p9), [#allocation3]   ;;  %s1313_s18 = int_to_ptr.vmem [resolvable:$true] %s791_s18 }
  0x14   : > { %s1052_s23 = scalar_lea.vmem (!%p244_p9), %s1313_s18, 16 }
  0x15   : > { %p1053_p11 = scmp.ne.s32.totalorder (!%p244_p9), %s1313_s18, %s1052_s23 }
  0x16   : > { %v1034_v1 = vld [vmem:[%s1353_s1 + $0x8] sm:$0xff]   ;;  %v1035_v2 = vld [vmem:[%s1353_s1] sm:$0xff]   ;;  %s276_s19 = scalar_select %p275_p10, %s1209_s16, 31  ;;  %v1044_v3 = vld [vmem:[%s1355_s3 + $0x38] sm:$0xff]   ;;  %vm360_vm0 = vcmask 261120   ;;  %vm1115_vm1 = vmmov 0  }
  0x17   : > { %919 = vmatprep.subr.bf16.mxu1 %v1034_v1  ;;  %v1045_v4 = vld [vmem:[%s1355_s3 + $0x30] sm:$0xff]   ;;  %v1046_v8 = vld [vmem:[%s1355_s3 + $0x28] sm:$0xff]   ;;  %v1047_v11 = vld [vmem:[%s1355_s3 + $0x20] sm:$0xff]   ;;  %p1054_p12 = pnand %p1053_p11, %p1196_p5 }
  0x18   : > { %920 = vmatpush3.bf16.msra.mxu1 %v1034_v1  ;;  %s851_s22 = sshll.u32 %s276_s19, 2  ;;  %v1048_v12 = vld [vmem:[%s1355_s3 + $0x18] sm:$0xff]   ;;  %v1049_v16 = vld [vmem:[%s1355_s3 + $0x10] sm:$0xff]   ;;  %v1050_v17 = vld [vmem:[%s1355_s3 + $0x8] sm:$0xff]  }
  0x19   : > { %921 = vmatprep.subr.bf16.mxu1 %v1035_v2  ;;  %s1222_s25 = scalar_lea.vmem %s1352_s0, %s851_s22  ;;  %v1051_v18 = vld [vmem:[%s1355_s3] sm:$0xff]   ;;  %s779_s22 = scalar_lea.sflag [#allocation4], %s272_s15 }
  0x1a   : > { %v1036_v5 = vld [vmem:[%s1222_s25] sm:$0xff]   ;;  %v1037_v6 = vld [vmem:[%s1222_s25 + $0x8] sm:$0xff]   ;;  %v1038_v7 = vld [vmem:[%s1222_s25 + $0x10] sm:$0xff]   ;;  %p1055_p13 = pneg %p1054_p12 }
  0x1b   : > { %923 = vmatprep.mubr.msk.bf16.mxu1 %vm360_vm0, %v1036_v5  ;;  %v1039_v9 = vld [vmem:[%s1222_s25 + $0x18] sm:$0xff]   ;;  %v1040_v10 = vld [vmem:[%s1222_s25 + $0x20] sm:$0xff]   ;;  %v1041_v13 = vld [vmem:[%s1222_s25 + $0x28] sm:$0xff]  }
  0x1c   : > { %922 = vmatpush3.bf16.msra.mxu1 %v1035_v2  ;;  %v1042_v14 = vld [vmem:[%s1222_s25 + $0x30] sm:$0xff]   ;;  %v1043_v15 = vld [vmem:[%s1222_s25 + $0x38] sm:$0xff]   ;;  %v852_v21 = vld [vmem:[%s1354_s2] ss:$0 sm:$0xff]  ;;  %s1056_s25 = sshll.u32 %s1117_s24, 4  ;;  %s1057_s25 = int_to_ptr.vmem [resolvable:$false] %s1056_s25 }
  0x1d   : > { %939 = vmatprep.subr.bf16.mxu1 %v1044_v3  ;;  %s1058_s6 = scalar_lea.vmem %s1057_s25, 32  ;;  %p1059_p0 = scmp.lt.s32.totalorder %s1313_s18, %s1057_s25 }
  0x1e   : > { %p1060_p1 = scmp.lt.s32.totalorder %s1058_s6, %s1052_s23 }
  0x1f   : > { %924 = vmatmul.mubr.msk.bf16.vlgmr.msra.gmra.mxu1 %vm360_vm0, %v1037_v6 }
  0x20   : > { %927 = vmatprep.mubr.msk.bf16.mxu1 %vm360_vm0, %v1038_v7  ;;  %940 = vmatpush3.bf16.msra.mxu1 %v1044_v3  ;;  %p1061_p2 = por %p1060_p1, %p1059_p0 }
  0x21   : > { %941 = vmatprep.subr.bf16.mxu1 %v1045_v4 }
  0x22   : > { %p1062_p3 = pnand %p1061_p2, %p1055_p13 }
  0x24   : > { %942 = vmatpush3.bf16.msra.mxu1 %v1045_v4 }
  0x25   : > { %943 = vmatprep.subr.bf16.mxu1 %v1046_v8 }
  0x27   : > { %928 = vmatmul.mubr.msk.bf16.gmra.mxu1 %vm360_vm0, %v1039_v9 }
  0x28   : > { %931 = vmatprep.mubr.msk.bf16.mxu1 %vm360_vm0, %v1040_v10  ;;  %944 = vmatpush3.bf16.msra.mxu1 %v1046_v8 }
  0x29   : > { %945 = vmatprep.subr.bf16.mxu1 %v1047_v11 }
  0x2c   : > { %946 = vmatpush3.bf16.msra.mxu1 %v1047_v11 }
  0x2d   : > { %947 = vmatprep.subr.bf16.mxu1 %v1048_v12 }
  0x2f   : > { %932 = vmatmul.mubr.msk.bf16.gmra.mxu1 %vm360_vm0, %v1041_v13  ;;  %v766_v13 = vld [vmem:[#allocation2] sm:$0x1] }
  0x30   : > { %935 = vmatprep.mubr.msk.bf16.mxu1 %vm360_vm0, %v1042_v14  ;;  %948 = vmatpush3.bf16.msra.mxu1 %v1048_v12  ;;  %v1114_v12 = vmov 0.0   ;;  %v1116_v14 = vmov 0  }
  0x31   : > { %949 = vmatprep.subr.bf16.mxu1 %v1049_v16  ;;  %971 = vmatprep.subr.bf16.mxu0 %v1114_v12 }
  0x32   : > { %987 = vmatprep.mubr.msk.bf16.mxu0 %vm1115_vm1, %v1114_v12  ;;  %1033 = vset.pattern.permute.xlu0 %v1116_v14 }
  0x33   : > { %769 = vperm.xlu0 %1033, %v766_v13  }
  0x34   : > { %950 = vmatpush3.bf16.msra.mxu1 %v1049_v16  ;;  %v1269_v16 = vld [vmem:[%s1356_s4] ss:$0 sm:$0xff] }
  0x35   : > { %951 = vmatprep.subr.bf16.mxu1 %v1050_v17 }
  0x37   : > { %936 = vmatmul.mubr.msk.bf16.gmra.mxu1 %vm360_vm0, %v1043_v15 }
  0x38   : > { %952 = vmatpush3.bf16.msra.mxu1 %v1050_v17 }
  0x39   : > { %953 = vmatprep.subr.bf16.mxu1 %v1051_v18 }
  0x3c   : > { %954 = vmatpush3.bf16.msra.mxu1 %v1051_v18 }
  0xdf   : > { %v925_v19 = vpop.f32.mrf.mxu1 }
  0xe0   : > { %v428_v25 = vadd.f32 %v925_v19, %v852_v21 }
  0xe1   : > { %v419_v20 = vpop.f32.mrf.mxu1 }
  0xe2   : > { %v420_v23 = vadd.f32 %v852_v21, %v419_v20  ;;  %v484_v32 = vmax.f32 %v428_v25, 0.0 }
  0xe3   : > { %v926_v22 = vpop.f32.mrf.mxu1 }
  0xe4   : > { %v431_v24 = vadd.f32 %v926_v22, %v852_v21  ;;  %v482_v30 = vmax.f32 %v420_v23, 0.0 }
  0xe5   : > { %v422_v26 = vpop.f32.mrf.mxu1 }
  0xe6   : > { %v423_v27 = vadd.f32 %v852_v21, %v422_v26  ;;  %v485_v28 = vmax.f32 %v431_v24, 0.0 }
  0xe7   : > { %v929_v29 = vpop.f32.mrf.mxu1 }
  0xe8   : > { %v483_v31 = vmax.f32 %v423_v27, 0.0  ;;  %v499_v35 = vpack.c.bf16 %v485_v28, %v484_v32  ;;  %v444_v39 = vadd.f32 %v929_v29, %v852_v21 }
  0xe9   : > { %v435_v33 = vpop.f32.mrf.mxu1 }
  0xea   : > { %v498_v34 = vpack.c.bf16 %v483_v31, %v482_v30  ;;  %v436_v37 = vadd.f32 %v852_v21, %v435_v33  ;;  %v488_v46 = vmax.f32 %v444_v39, 0.0 }
  0xeb   : > { %v930_v36 = vpop.f32.mrf.mxu1 }
  0xec   : > { %v447_v38 = vadd.f32 %v930_v36, %v852_v21  ;;  %955 = vmatprep.mubr.bf16.mxu1 %v498_v34  ;;  %v486_v44 = vmax.f32 %v436_v37, 0.0 }
  0xed   : > { %v438_v40 = vpop.f32.mrf.mxu1  ;;  %956 = vmatmul.mubr.bf16.vlgmr.msra.gmra.mxu1 %v499_v35 }
  0xee   : > { %v439_v41 = vadd.f32 %v852_v21, %v438_v40  ;;  %v489_v42 = vmax.f32 %v447_v38, 0.0 }
  0xef   : > { %v933_v43 = vpop.f32.mrf.mxu1 }
  0xf0   : > { %v487_v45 = vmax.f32 %v439_v41, 0.0  ;;  %v501_v49 = vpack.c.bf16 %v489_v42, %v488_v46  ;;  %v460_v53 = vadd.f32 %v933_v43, %v852_v21 }
  0xf1   : > { %v451_v47 = vpop.f32.mrf.mxu1 }
  0xf2   : > { %v500_v48 = vpack.c.bf16 %v487_v45, %v486_v44  ;;  %v452_v51 = vadd.f32 %v852_v21, %v451_v47  ;;  %v492_v60 = vmax.f32 %v460_v53, 0.0 }
  0xf3   : > { %v934_v50 = vpop.f32.mrf.mxu1 }
  0xf4   : > { %v463_v52 = vadd.f32 %v934_v50, %v852_v21  ;;  %959 = vmatprep.mubr.bf16.mxu1 %v500_v48  ;;  %v490_v58 = vmax.f32 %v452_v51, 0.0 }
  0xf5   : > { %v454_v54 = vpop.f32.mrf.mxu1  ;;  %960 = vmatmul.mubr.bf16.gmra.mxu1 %v501_v49 }
  0xf6   : > { %v455_v55 = vadd.f32 %v852_v21, %v454_v54  ;;  %v493_v56 = vmax.f32 %v463_v52, 0.0 }
  0xf7   : > { %v937_v57 = vpop.f32.mrf.mxu1 }
  0xf8   : > { %v491_v59 = vmax.f32 %v455_v55, 0.0  ;;  %v503_v63 = vpack.c.bf16 %v493_v56, %v492_v60  ;;  %v476_v3 = vadd.f32 %v937_v57, %v852_v21 }
  0xf9   : > { %v467_v61 = vpop.f32.mrf.mxu1 }
  0xfa   : > { %v502_v62 = vpack.c.bf16 %v491_v59, %v490_v58  ;;  %v468_v1 = vadd.f32 %v852_v21, %v467_v61  ;;  %v496_v9 = vmax.f32 %v476_v3, 0.0 }
  0xfb   : > { %v938_v0 = vpop.f32.mrf.mxu1 }
  0xfc   : > { %v479_v2 = vadd.f32 %v938_v0, %v852_v21  ;;  %963 = vmatprep.mubr.bf16.mxu1 %v502_v62  ;;  %v494_v7 = vmax.f32 %v468_v1, 0.0 }
  0xfd   : > { %v470_v4 = vpop.f32.mrf.mxu1  ;;  %964 = vmatmul.mubr.bf16.gmra.mxu1 %v503_v63 }
  0xfe   : > { %v471_v5 = vadd.f32 %v852_v21, %v470_v4  ;;  %v497_v6 = vmax.f32 %v479_v2, 0.0 }
 0x100   : > { %v495_v8 = vmax.f32 %v471_v5, 0.0  ;;  %v505_v11 = vpack.c.bf16 %v497_v6, %v496_v9 }
 0x102   : > { %v504_v10 = vpack.c.bf16 %v495_v8, %v494_v7 }
 0x104   : > { %967 = vmatprep.mubr.bf16.mxu1 %v504_v10 }
 0x105   : > { %968 = vmatmul.mubr.bf16.gmra.mxu1 %v505_v11 }
 0x1ad   : > { %v957_v15 = vpop.f32.mrf.mxu1 }
 0x1ae   : > { %v620_v18 = vadd.f32 %v957_v15, %v1269_v16 }
 0x1af   : > { %v611_v17 = vpop.f32.mrf.mxu1 }
 0x1b0   : > { %v612_v20 = vadd.f32 %v1269_v16, %v611_v17  ;;  %v676_v23 = vmax.f32 %v620_v18, 0.0  ;;  %v690_v17 = vld [vmem:[%s1357_s5] sm:$0xf]  ;;  %v772_v18 = vlaneseq }
 0x1b1   : > { %v958_v19 = vpop.f32.mrf.mxu1 }
 0x1b2   : > { %v623_v21 = vadd.f32 %v958_v19, %v1269_v16  ;;  %v674_v27 = vmax.f32 %v612_v20, 0.0  ;;  %v773_v19 = vshrl.u32 %v772_v18, 7 }
 0x1b3   : > { %v614_v22 = vpop.f32.mrf.mxu1 }
 0x1b4   : > { %v677_v24 = vmax.f32 %v623_v21, 0.0  ;;  %v615_v25 = vadd.f32 %v1269_v16, %v614_v22  ;;  %v774_v20 = vsub.s32 0, %v773_v19  ;;  %v770_v21 = vpop.permute.xlu0 %769 }
 0x1b5   : > { %v961_v26 = vpop.f32.mrf.mxu1 }
 0x1b6   : > { %v692_v28 = vpack.c.bf16 %v677_v24, %v676_v23  ;;  %v675_v29 = vmax.f32 %v615_v25, 0.0  ;;  %v636_v2 = vadd.f32 %v961_v26, %v1269_v16  ;;  %v775_v22 = vrot.slane %v770_v21, %v774_v20 }
 0x1b7   : > { %v627_v30 = vpop.f32.mrf.mxu1 }
 0x1b8   : > { %v691_v31 = vpack.c.bf16 %v675_v29, %v674_v27  ;;  %v680_v5 = vmax.f32 %v636_v2, 0.0  ;;  %v628_v8 = vadd.f32 %v1269_v16, %v627_v30  ;;  %v706_v15 = vsel %vm360_vm0, %v692_v28, 0 }
 0x1b9   : > { %v962_v32 = vpop.f32.mrf.mxu1 }
 0x1ba   : > { %v639_v0 = vadd.f32 %v962_v32, %v1269_v16  ;;  %v678_v11 = vmax.f32 %v628_v8, 0.0 }
 0x1bb   : > { %v630_v33 = vpop.f32.mrf.mxu1 }
 0x1bc   : > { %v681_v3 = vmax.f32 %v639_v0, 0.0  ;;  %v631_v7 = vadd.f32 %v1269_v16, %v630_v33 }
 0x1bd   : > { %v965_v34 = vpop.f32.mrf.mxu1 }
 0x1be   : > { %v652_v54 = vadd.f32 %v965_v34, %v1269_v16  ;;  %v694_v6 = vpack.c.bf16 %v681_v3, %v680_v5  ;;  %v679_v9 = vmax.f32 %v631_v7, 0.0 }
 0x1bf   : > { %v643_v35 = vpop.f32.mrf.mxu1 }
 0x1c0   : > { %v684_v57 = vmax.f32 %v652_v54, 0.0  ;;  %v644_v60 = vadd.f32 %v1269_v16, %v643_v35  ;;  %v712_v10 = vsel %vm360_vm0, %v694_v6, 0  ;;  %v693_v13 = vpack.c.bf16 %v679_v9, %v678_v11 }
 0x1c1   : > { %v966_v36 = vpop.f32.mrf.mxu1 }
 0x1c2   : > { %v655_v52 = vadd.f32 %v966_v36, %v1269_v16  ;;  %v682_v63 = vmax.f32 %v644_v60, 0.0  ;;  %v709_v14 = vsel %vm360_vm0, %v693_v13, 0 }
 0x1c3   : > { %v646_v37 = vpop.f32.mrf.mxu1 }
 0x1c4   : > { %v685_v55 = vmax.f32 %v655_v52, 0.0  ;;  %v647_v59 = vadd.f32 %v1269_v16, %v646_v37 }
 0x1c5   : > { %v969_v38 = vpop.f32.mrf.mxu1 }
 0x1c6   : > { %v668_v40 = vadd.f32 %v969_v38, %v1269_v16  ;;  %v696_v58 = vpack.c.bf16 %v685_v55, %v684_v57  ;;  %v683_v61 = vmax.f32 %v647_v59, 0.0 }
 0x1c7   : > { %v659_v39 = vpop.f32.mrf.mxu1 }
 0x1c8   : > { %v688_v44 = vmax.f32 %v668_v40, 0.0  ;;  %v660_v47 = vadd.f32 %v1269_v16, %v659_v39  ;;  %v718_v62 = vsel %vm360_vm0, %v696_v58, 0  ;;  %v695_v1 = vpack.c.bf16 %v683_v61, %v682_v63 }
 0x1c9   : > { %v970_v41 = vpop.f32.mrf.mxu1 }
 0x1ca   : > { %v671_v42 = vadd.f32 %v970_v41, %v1269_v16  ;;  %v686_v51 = vmax.f32 %v660_v47, 0.0  ;;  %v715_v4 = vsel %vm360_vm0, %v695_v1, 0 }
 0x1cb   : > { %v662_v43 = vpop.f32.mrf.mxu1 }
 0x1cc   : > { %v689_v45 = vmax.f32 %v671_v42, 0.0  ;;  %v663_v46 = vadd.f32 %v1269_v16, %v662_v43  ;;  %v703_v16 = vsel %vm360_vm0, %v691_v31, 0 }
 0x1ce   : > { %v698_v48 = vpack.c.bf16 %v689_v45, %v688_v44  ;;  %v687_v49 = vmax.f32 %v663_v46, 0.0 }
 0x1d0   : > { %v724_v50 = vsel %vm360_vm0, %v698_v48, 0  ;;  %v697_v53 = vpack.c.bf16 %v687_v49, %v686_v51 }
 0x1d1   : > { %972 = vmatpush3.bf16.xpose.msra.mxu0 %v724_v50 }
 0x1d2   : > { %973 = vmatprep.subr.bf16.mxu0 %v1114_v12  ;;  %v721_v56 = vsel %vm360_vm0, %v697_v53, 0 }
 0x1d9   : > { %974 = vmatpush3.bf16.xpose.msra.mxu0 %v721_v56 }
 0x1da   : > { %975 = vmatprep.subr.bf16.mxu0 %v1114_v12 }
 0x1e1   : > { %976 = vmatpush3.bf16.xpose.msra.mxu0 %v718_v62 }
 0x1e2   : > { %977 = vmatprep.subr.bf16.mxu0 %v1114_v12 }
 0x1e9   : > { %978 = vmatpush3.bf16.xpose.msra.mxu0 %v715_v4 }
 0x1ea   : > { %979 = vmatprep.subr.bf16.mxu0 %v1114_v12 }
 0x1f1   : > { %980 = vmatpush3.bf16.xpose.msra.mxu0 %v712_v10 }
 0x1f2   : > { %981 = vmatprep.subr.bf16.mxu0 %v1114_v12 }
 0x1f9   : > { %982 = vmatpush3.bf16.xpose.msra.mxu0 %v709_v14 }
 0x1fa   : > { %983 = vmatprep.subr.bf16.mxu0 %v1114_v12 }
 0x201   : > { %984 = vmatpush3.bf16.xpose.msra.mxu0 %v706_v15 }
 0x202   : > { %985 = vmatprep.subr.bf16.mxu0 %v1114_v12 }
 0x209   : > { %986 = vmatpush3.bf16.xpose.msra.mxu0 %v703_v16 }
 0x210   : > { %988 = vmatmul.mubr.msk.bf16.vlgmr.msra.gmra.mxu0 %vm360_vm0, %v690_v17 }
 0x2d0   : > { %v760_v23 = vpop.f32.mrf.mxu0 }
 0x2d1   : > { %v776_v12 = vadd.f32 %v775_v22, %v760_v23 }
 0x2d2   : > { %v989_v24 = vpop.f32.mrf.mxu0 }
 0x2d3   : > { %777 = vst [vmem:[%s273_s17] sm:$0x1] %v776_v12 }
 0x2d4   : > { %v763_v25 = vpop.f32.mrf.mxu0 }
 0x2d5   : > { %1065 = shalt.err (!%p1062_p3)
}
 0x2d6   : > { %s1066_s16 = scalar_lea.hbm %s1311_s21, 16  ;;  %s1070_s10 = scalar_lea.hbm %s1359_s7, 32 }
 0x2d7   : > { %p1067_p4 = scmp.ne.s32.totalorder %s1311_s21, %s1066_s16  ;;  %p1071_p9 = scmp.lt.s32.totalorder %s1311_s21, %s1359_s7 }
 0x2d8   : > { %p1072_p10 = scmp.lt.s32.totalorder %s1070_s10, %s1066_s16 }
 0x2d9   : > { %p1068_p7 = pnand %p1067_p4, %p1196_p5 }
 0x2da   : > { %p1073_p11 = por %p1072_p10, %p1071_p9 }
 0x2db   : > { %p1069_p8 = pneg %p1068_p7 }
 0x2dd   : > { %p1074_p12 = pnand %p1073_p11, %p1069_p8 }
 0x2df   : > { %1077 = shalt.err (!%p1074_p12)
}
 0x2e0   : > { %991 = dma.vmem_to_hbm [thread:$0]  (%p1196_p5), %s1313_s18, 16, %s1311_s21, %s779_s22   ;;  %v990_v26 = vpop.f32.mrf.mxu0 }
 0x2e1 PF: > { %p997_p13 = scmp.ge.s32.totalorder %s1112_s29, 2  ;;  %s803_s17 = sand.u32 1, %s1100_s26  }
 0x2e2   : > { %s804_s19 = scalar_lea.sflag [#allocation4], %s803_s17 }
 0x2e3   : > { %p994_p0 = pnand %p997_p13, %p1200_p6 }
 0x2e5   : > { %p995_p1 = pneg %p994_p0 }
 0x2e7   : > { %1095 = dma.done.wait (%p995_p1), %s804_s19, 16  }
 0x2e8   : > { %1097 = vsyncadd (%p995_p1), %s804_s19, 4294967280  ;;  %p19_p2 = scmp.ge.s32.totalorder %s1184_s8, 4   ;;  %s1362_s26 = smov %s1104_s27 }
 0x2e9   : > { %s1363_s27 = smov %s1108_s28  ;;  %s1364_s28 = smov %s1194_s11 }
 0x2ea   : > { %s1365_s29 = smov %s1184_s8  ;;  %21 = sbr.rel (!%p19_p2) target bundleno = 6 (0x6), region = 83 }
 0x2ef   :  { %808 = vsyncpa [#allocation4], 1 }
 0x2f0   :  { %810 = vsyncpa [#allocation4 + $0x1], 1 }

</bundles_post_ra>
